<compile_context>
chip_gen: v5e
topology: v5e:2x2
jax: 0.10.0
libtpu: 0.0.40
codegen_flags: <defaults>
</compile_context>

<pallas_src>
import math

import jax
import jax.numpy as jnp
from jax.experimental import pallas as pl
from jax.experimental.pallas import tpu as pltpu


# ----------------------------------------------------------------------------
# Schedule (setup-time glue, matches _cosine_variance_schedule_generator)
# ----------------------------------------------------------------------------
def cosine_alphas_cumprod(timesteps: int, epsilon: float = 0.008) -> jnp.ndarray:
    steps = jnp.linspace(0.0, timesteps, timesteps + 1, dtype=jnp.float32)
    f_t = jnp.cos((steps / timesteps + epsilon) / (1.0 + epsilon) * math.pi * 0.5) ** 2
    betas = jnp.clip(1.0 - f_t[1:] / f_t[:timesteps], 0.0, 0.999)
    alphas = 1.0 - betas
    return jnp.cumprod(alphas, axis=-1)  # (timesteps,) float32


# ----------------------------------------------------------------------------
# Pallas kernel: one batch block -> forward-diffusion mix + pointwise denoiser
# ----------------------------------------------------------------------------
def diffusion_kernel(x0_ref, nz_ref, sc_ref, tb_ref, w_in_ref, w_out_ref,
                     b_out_ref, out_ref):
    """Block views (natural (B, C, HW) layout, lanes = HW):
      x0_ref, nz_ref : (ipb, C, HW)
      sc_ref         : (ipb, 2, 1)      -- [:,0]=sqrt(ac[t]), [:,1]=sqrt(1-ac[t])
      tb_ref         : (ipb, CMID, 1)   -- per-image  b_in + w_t @ temb[b]
      w_in_ref       : (CMID, C)
      w_out_ref      : (C, CMID)
      b_out_ref      : (C, 1)
      out_ref        : (ipb, C, HW)
    """
    ipb, C, HW = out_ref.shape
    CMID = w_in_ref.shape[0]

    x0 = x0_ref[...].astype(jnp.float32)
    nz = nz_ref[...].astype(jnp.float32)
    sac = sc_ref[:, 0:1, :]                                  # (ipb, 1, 1)
    s1m = sc_ref[:, 1:2, :]                                  # (ipb, 1, 1)

    # forward diffusion mix (VPU; per-image scalar broadcast)
    x_t = sac * x0 + s1m * nz                                # (ipb, C, HW)

    # input projection on the MXU (K = C is tiny but the MXU slot is idle;
    # keeps the 4 VALU slots free on v6e/v7x)
    w_in_b = jnp.broadcast_to(w_in_ref[...][None], (ipb, CMID, C))
    h = jnp.einsum("bmc,bcw->bmw", w_in_b, x_t,
                   preferred_element_type=jnp.float32)       # (ipb, CMID, HW)

    # per-image time bias: natural broadcast over the HW lanes
    h = h + tb_ref[...]

    # SiLU (exp goes to the EUP slot)
    h = h * (1.0 / (1.0 + jnp.exp(-h)))

    # output projection: K = CMID -> MXU
    w_out_b = jnp.broadcast_to(w_out_ref[...][None], (ipb, C, CMID))
    pred = jnp.einsum("bcm,bmw->bcw", w_out_b, h,
                      preferred_element_type=jnp.float32)    # (ipb, C, HW)

    out_ref[...] = (pred + b_out_ref[...][None]).astype(out_ref.dtype)


# ----------------------------------------------------------------------------
# Wrapper
# ----------------------------------------------------------------------------
def diffusion_forward(x0, noise, t, alphas_cumprod, params, *,
                      num_batch_blocks=None, storage_dtype=jnp.float32):
    """x0, noise: (B, C, H, W) float32; t: (B,) int32 -> (B, C, H, W) float32.

    storage_dtype=jnp.bfloat16 halves x0/noise HBM traffic (recommended on
    v5e/v6e); compute stays f32 inside the kernel.
    """
    B, C, H, W = x0.shape
    HW = H * W
    # TODO(synk): for real MNIST (HW=784) pad HW to 896 = 7*128 in the wrapper
    # (and crop the padded lanes after the kernel) so the lane axis stays
    # 128-aligned.
    assert HW % 128 == 0, "HW must be a multiple of 128 (pad in the wrapper)"

    if num_batch_blocks is None:
        # a few pipelined steps; even count also engages both v7x TensorCores
        num_batch_blocks = next(n for n in (4, 2, 1) if B % n == 0)
    assert B % num_batch_blocks == 0
    ipb = B // num_batch_blocks  # images per grid step

    # Natural layout: (B, C, HW) is a free reshape of NCHW -- no relayout.
    x0_r = x0.reshape(B, C, HW).astype(storage_dtype)
    nz_r = noise.reshape(B, C, HW).astype(storage_dtype)

    # Per-image forward-diffusion coefficients (tiny, no repeat over HW).
    t = jnp.clip(t.astype(jnp.int32), 0, alphas_cumprod.shape[0] - 1)
    ac_t = jnp.take(alphas_cumprod, t)                               # (B,)
    sc = jnp.stack([jnp.sqrt(ac_t), jnp.sqrt(1.0 - ac_t)],
                   axis=-1).reshape(B, 2, 1)                         # (B, 2, 1)

    # Time embedding + projection precomputed (tiny); fold b_in into it.
    temb = params["temb_fn"](t)                                      # (B, TDIM)
    w_in, b_in, w_t = params["w_in"], params["b_in"], params["w_t"]
    w_out, b_out = params["w_out"], params["b_out"]
    cmid = w_in.shape[0]
    tb = (temb @ w_t.T + b_in[:, 0][None, :]).reshape(B, cmid, 1)    # (B, CMID, 1)

    # VMEM budget (double-buffered in/out + hidden temporaries), v7x-safe cap.
    in_bytes = jnp.dtype(storage_dtype).itemsize
    blk_in = ipb * C * HW * in_bytes
    blk_out = ipb * C * HW * 4
    blk_h = ipb * cmid * HW * 4
    vmem_est = 2 * (2 * blk_in) + 2 * blk_out + 4 * blk_h
    vmem_limit = int(min(max(4 * vmem_est, 16 * 2**20), 32 * 2**20))

    cost = pl.CostEstimate(
        flops=4 * B * HW * C * cmid,               # two matmuls
        transcendentals=B * HW * cmid,             # sigmoid
        bytes_accessed=2 * B * C * HW * in_bytes + B * C * HW * 4,
    )

    out = pl.pallas_call(
        diffusion_kernel,
        out_shape=jax.ShapeDtypeStruct((B, C, HW), jnp.float32),
        grid=(num_batch_blocks,),
        in_specs=[
            pl.BlockSpec((ipb, C, HW), lambda i: (i, 0, 0)),      # x0
            pl.BlockSpec((ipb, C, HW), lambda i: (i, 0, 0)),      # noise
            pl.BlockSpec((ipb, 2, 1), lambda i: (i, 0, 0)),       # mix scales
            pl.BlockSpec((ipb, cmid, 1), lambda i: (i, 0, 0)),    # b_in + t_proj
            pl.BlockSpec((cmid, C), lambda i: (0, 0)),            # w_in
            pl.BlockSpec((C, cmid), lambda i: (0, 0)),            # w_out
            pl.BlockSpec((C, 1), lambda i: (0, 0)),               # b_out
        ],
        out_specs=pl.BlockSpec((ipb, C, HW), lambda i: (i, 0, 0)),
        compiler_params=pltpu.CompilerParams(
            dimension_semantics=("parallel",),
            vmem_limit_bytes=vmem_limit),
        cost_estimate=cost,
    )(x0_r, nz_r, sc, tb, w_in, w_out, b_out)

    return out.reshape(B, C, H, W)   # free reshape, no transpose


# ----------------------------------------------------------------------------
# Pure-JAX reference (same math, no Pallas) for a sanity check
# ----------------------------------------------------------------------------
def diffusion_forward_ref(x0, noise, t, alphas_cumprod, params):
    B, C, H, W = x0.shape
    t = jnp.clip(t.astype(jnp.int32), 0, alphas_cumprod.shape[0] - 1)
    ac = jnp.take(alphas_cumprod, t).reshape(B, 1, 1, 1)
    x_t = jnp.sqrt(ac) * x0 + jnp.sqrt(1.0 - ac) * noise
    temb = params["temb_fn"](t)
    tproj = temb @ params["w_t"].T + params["b_in"][:, 0][None, :]   # (B, CMID)
    xf = x_t.reshape(B, C, H * W)
    hp = jax.lax.Precision.HIGHEST
    h = jnp.einsum("mc,bcw->bmw", params["w_in"], xf, precision=hp) \
        + tproj[:, :, None]
    h = h * jax.nn.sigmoid(h)
    pred = jnp.einsum("cm,bmw->bcw", params["w_out"], h, precision=hp) \
        + params["b_out"][None, :, :]
    return pred.reshape(B, C, H, W)


# ----------------------------------------------------------------------------
# Deterministic parameter / input construction
# ----------------------------------------------------------------------------
def make_params(key, in_channels, base_dim, time_embedding_dim):
    k1, k2, k3 = jax.random.split(key, 3)
    cmid, tdim, C = base_dim, time_embedding_dim, in_channels
    params = {
        "w_in": jax.random.normal(k1, (cmid, C), jnp.float32) * (1.0 / math.sqrt(C)),
        "b_in": jnp.zeros((cmid, 1), jnp.float32),
        "w_t": jax.random.normal(k2, (cmid, tdim), jnp.float32) * (1.0 / math.sqrt(tdim)),
        "w_out": jax.random.normal(k3, (C, cmid), jnp.float32) * (1.0 / math.sqrt(cmid)),
        "b_out": jnp.zeros((C, 1), jnp.float32),
    }

    half = tdim // 2
    freqs = jnp.exp(-math.log(10000.0) * jnp.arange(half, dtype=jnp.float32) / half)

    def temb_fn(t):
        args = t.astype(jnp.float32)[:, None] * freqs[None, :]
        return jnp.concatenate([jnp.sin(args), jnp.cos(args)], axis=-1)  # (B, tdim)

    params["temb_fn"] = temb_fn
    return params


if __name__ == "__main__":
    # Small config consistent with DiffusionToyModelforMNIST(image_size, in_channels, ...)
    B, C, H, W = 2, 4, 16, 16
    TIMESTEPS = 1000
    TIME_EMB_DIM = 32      # reduced from default 256 for a small example
    BASE_DIM = 32

    key = jax.random.PRNGKey(0)
    k_x, k_n, k_t, k_p = jax.random.split(key, 4)

    x0 = jax.random.normal(k_x, (B, C, H, W), jnp.float32)
    noise = jax.random.normal(k_n, (B, C, H, W), jnp.float32)
    t = jax.random.randint(k_t, (B,), 0, TIMESTEPS, jnp.int32)   # torch.randint equivalent

    alphas_cumprod = cosine_alphas_cumprod(TIMESTEPS)
    params = make_params(k_p, C, BASE_DIM, TIME_EMB_DIM)

    pred_noise = diffusion_forward(x0, noise, t, alphas_cumprod, params)
    jax.block_until_ready(pred_noise)

    assert pred_noise.shape == (B, C, H, W)
    assert not bool(jnp.any(jnp.isnan(pred_noise)))

    # Sanity check vs. pure-JAX reference (reference matmuls at HIGHEST
    # precision; the in-kernel MXU matmuls run at default precision, so allow
    # ~1e-2-level rounding differences while still catching layout/broadcast
    # bugs, which would be O(1)).
    ref = diffusion_forward_ref(x0, noise, t, alphas_cumprod, params)
    err = float(jnp.max(jnp.abs(pred_noise - ref)))
    assert err < 3e-2, f"mismatch vs reference: {err}"

    print("KERNEL_OK")
</pallas_src>

<mosaic_0001>
module attributes {stable_mosaic.version = 11 : i64} {
  func.func @diffusion_kernel(%arg0: i32, %arg1: memref<1x4x256xf32, #tpu.memory_space<vmem>>, %arg2: memref<1x4x256xf32, #tpu.memory_space<vmem>>, %arg3: memref<1x2x1xf32, #tpu.memory_space<vmem>>, %arg4: memref<1x32x1xf32, #tpu.memory_space<vmem>>, %arg5: memref<32x4xf32, #tpu.memory_space<vmem>>, %arg6: memref<4x32xf32, #tpu.memory_space<vmem>>, %arg7: memref<4x1xf32, #tpu.memory_space<vmem>>, %arg8: memref<1x4x256xf32, #tpu.memory_space<vmem>>) attributes {dimension_semantics = [#tpu.dimension_semantics<parallel>], iteration_bounds = array<i64: 2>, scalar_prefetch = 0 : i64, scratch_operands = 0 : i64, tpu.core_type = #tpu.core_type<tc>, window_params = [{transform_indices = @transform_0, window_bounds = array<i64: 1, 4, 256>}, {transform_indices = @transform_1, window_bounds = array<i64: 1, 4, 256>}, {transform_indices = @transform_2, window_bounds = array<i64: 1, 2, 1>}, {transform_indices = @transform_3, window_bounds = array<i64: 1, 32, 1>}, {pipeline_mode = #tpu.pipeline_mode<synchronous>, transform_indices = @transform_4, window_bounds = array<i64: 32, 4>}, {pipeline_mode = #tpu.pipeline_mode<synchronous>, transform_indices = @transform_5, window_bounds = array<i64: 4, 32>}, {pipeline_mode = #tpu.pipeline_mode<synchronous>, transform_indices = @transform_6, window_bounds = array<i64: 4, 1>}, {transform_indices = @transform_7, window_bounds = array<i64: 1, 4, 256>}]} {
    %c0 = arith.constant 0 : index
    %c0_0 = arith.constant 0 : index
    %c0_1 = arith.constant 0 : index
    %0 = vector.load %arg1[%c0, %c0_0, %c0_1] : memref<1x4x256xf32, #tpu.memory_space<vmem>>, vector<1x4x256xf32>
    %c0_2 = arith.constant 0 : index
    %c0_3 = arith.constant 0 : index
    %c0_4 = arith.constant 0 : index
    %1 = vector.load %arg2[%c0_2, %c0_3, %c0_4] : memref<1x4x256xf32, #tpu.memory_space<vmem>>, vector<1x4x256xf32>
    %c0_5 = arith.constant 0 : index
    %c0_6 = arith.constant 0 : index
    %c0_7 = arith.constant 0 : index
    %2 = vector.load %arg3[%c0_5, %c0_6, %c0_7] : memref<1x2x1xf32, #tpu.memory_space<vmem>>, vector<1x1x1xf32>
    %c0_8 = arith.constant 0 : index
    %c1 = arith.constant 1 : index
    %c0_9 = arith.constant 0 : index
    %3 = vector.load %arg3[%c0_8, %c1, %c0_9] : memref<1x2x1xf32, #tpu.memory_space<vmem>>, vector<1x1x1xf32>
    %4 = vector.broadcast %2 : vector<1x1x1xf32> to vector<1x4x256xf32>
    %5 = arith.mulf %4, %0 : vector<1x4x256xf32>
    %6 = vector.broadcast %3 : vector<1x1x1xf32> to vector<1x4x256xf32>
    %7 = arith.mulf %6, %1 : vector<1x4x256xf32>
    %8 = arith.addf %5, %7 : vector<1x4x256xf32>
    %c0_10 = arith.constant 0 : index
    %c0_11 = arith.constant 0 : index
    %9 = vector.load %arg5[%c0_10, %c0_11] : memref<32x4xf32, #tpu.memory_space<vmem>>, vector<32x4xf32>
    %10 = vector.shape_cast %9 : vector<32x4xf32> to vector<1x32x4xf32>
    "tpu.trace_start"() <{level = 10 : i32, message = "bmc,bcw->bmw"}> : () -> ()
    %cst = arith.constant dense<0.000000e+00> : vector<1x32x256xf32>
    %11 = tpu.matmul %10, %8, %cst {dimension_numbers = #tpu.dot_dimension_numbers<[2], [1], [1], [2], [0, 0, 0, 1, 1, 2], [0], [0]>} : vector<1x32x4xf32>, vector<1x4x256xf32>, vector<1x32x256xf32> -> vector<1x32x256xf32>
    "tpu.trace_stop"() : () -> ()
    %c0_12 = arith.constant 0 : index
    %c0_13 = arith.constant 0 : index
    %c0_14 = arith.constant 0 : index
    %12 = vector.load %arg4[%c0_12, %c0_13, %c0_14] : memref<1x32x1xf32, #tpu.memory_space<vmem>>, vector<1x32x1xf32>
    %13 = vector.broadcast %12 : vector<1x32x1xf32> to vector<1x32x256xf32>
    %14 = arith.addf %11, %13 : vector<1x32x256xf32>
    %cst_15 = arith.constant 0.000000e+00 : f32
    %15 = vector.broadcast %cst_15 : f32 to vector<1x32x256xf32>
    %16 = arith.subf %15, %14 : vector<1x32x256xf32>
    %17 = math.exp %16 : vector<1x32x256xf32>
    %cst_16 = arith.constant 1.000000e+00 : f32
    %18 = vector.broadcast %cst_16 : f32 to vector<1x32x256xf32>
    %19 = arith.addf %18, %17 : vector<1x32x256xf32>
    %cst_17 = arith.constant 1.000000e+00 : f32
    %20 = vector.broadcast %cst_17 : f32 to vector<1x32x256xf32>
    %21 = arith.divf %20, %19 : vector<1x32x256xf32>
    %22 = arith.mulf %14, %21 : vector<1x32x256xf32>
    %c0_18 = arith.constant 0 : index
    %c0_19 = arith.constant 0 : index
    %23 = vector.load %arg6[%c0_18, %c0_19] : memref<4x32xf32, #tpu.memory_space<vmem>>, vector<4x32xf32>
    %24 = vector.shape_cast %23 : vector<4x32xf32> to vector<1x4x32xf32>
    "tpu.trace_start"() <{level = 10 : i32, message = "bcm,bmw->bcw"}> : () -> ()
    %cst_20 = arith.constant dense<0.000000e+00> : vector<1x4x256xf32>
    %25 = tpu.matmul %24, %22, %cst_20 {dimension_numbers = #tpu.dot_dimension_numbers<[2], [1], [1], [2], [0, 0, 0, 1, 1, 2], [0], [0]>} : vector<1x4x32xf32>, vector<1x32x256xf32>, vector<1x4x256xf32> -> vector<1x4x256xf32>
    "tpu.trace_stop"() : () -> ()
    %c0_21 = arith.constant 0 : index
    %c0_22 = arith.constant 0 : index
    %26 = vector.load %arg7[%c0_21, %c0_22] : memref<4x1xf32, #tpu.memory_space<vmem>>, vector<4x1xf32>
    %27 = vector.shape_cast %26 : vector<4x1xf32> to vector<1x4x1xf32>
    %28 = vector.broadcast %27 : vector<1x4x1xf32> to vector<1x4x256xf32>
    %29 = arith.addf %25, %28 : vector<1x4x256xf32>
    %c0_23 = arith.constant 0 : index
    %c0_24 = arith.constant 0 : index
    %c0_25 = arith.constant 0 : index
    %30 = vector.load %arg8[%c0_23, %c0_24, %c0_25] : memref<1x4x256xf32, #tpu.memory_space<vmem>>, vector<1x4x256xf32>
    tpu.vector_store %arg8[%c0_23, %c0_24, %c0_25], %29 {strides = array<i32>} : memref<1x4x256xf32, #tpu.memory_space<vmem>>, vector<1x4x256xf32>,
    return
  }
  func.func @transform_0(%arg0: i32) -> (i32, i32, i32) {
    %c0_i32 = arith.constant 0 : i32
    %c0_i32_0 = arith.constant 0 : i32
    %c0_i32_1 = arith.constant 0 : i32
    return %arg0, %c0_i32, %c0_i32_0 : i32, i32, i32
  }
  func.func @transform_1(%arg0: i32) -> (i32, i32, i32) {
    %c0_i32 = arith.constant 0 : i32
    %c0_i32_0 = arith.constant 0 : i32
    %c0_i32_1 = arith.constant 0 : i32
    return %arg0, %c0_i32, %c0_i32_0 : i32, i32, i32
  }
  func.func @transform_2(%arg0: i32) -> (i32, i32, i32) {
    %c0_i32 = arith.constant 0 : i32
    %c0_i32_0 = arith.constant 0 : i32
    %c0_i32_1 = arith.constant 0 : i32
    return %arg0, %c0_i32, %c0_i32_0 : i32, i32, i32
  }
  func.func @transform_3(%arg0: i32) -> (i32, i32, i32) {
    %c0_i32 = arith.constant 0 : i32
    %c0_i32_0 = arith.constant 0 : i32
    %c0_i32_1 = arith.constant 0 : i32
    return %arg0, %c0_i32, %c0_i32_0 : i32, i32, i32
  }
  func.func @transform_4(%arg0: i32) -> (i32, i32) {
    %c0_i32 = arith.constant 0 : i32
    %c0_i32_0 = arith.constant 0 : i32
    %c0_i32_1 = arith.constant 0 : i32
    return %c0_i32, %c0_i32_0 : i32, i32
  }
  func.func @transform_5(%arg0: i32) -> (i32, i32) {
    %c0_i32 = arith.constant 0 : i32
    %c0_i32_0 = arith.constant 0 : i32
    %c0_i32_1 = arith.constant 0 : i32
    return %c0_i32, %c0_i32_0 : i32, i32
  }
  func.func @transform_6(%arg0: i32) -> (i32, i32) {
    %c0_i32 = arith.constant 0 : i32
    %c0_i32_0 = arith.constant 0 : i32
    %c0_i32_1 = arith.constant 0 : i32
    return %c0_i32, %c0_i32_0 : i32, i32
  }
  func.func @transform_7(%arg0: i32) -> (i32, i32, i32) {
    %c0_i32 = arith.constant 0 : i32
    %c0_i32_0 = arith.constant 0 : i32
    %c0_i32_1 = arith.constant 0 : i32
    return %arg0, %c0_i32, %c0_i32_0 : i32, i32, i32
  }
}

</mosaic_0001>

<bundles_post_ra>
// kernel: tpu_custom_call.1
= control target key start
LH: loop header
LB: loop body
LE: loop exit
PB: predicated region body
PF: predicated region fallthrough
CT: control target
= control target key end

     0   :  { %12 = vsyncpa [#allocation3], 0  ;;  %s1308_s0 = inlined_call_operand.vmem [shape: f32[2,4,256], index: 0, kind: input, shape index: {}]   ;;  %s1309_s1 = inlined_call_operand.vmem [shape: f32[2,4,256], index: 1, kind: input, shape index: {}]   ;;  %s1310_s2 = inlined_call_operand.vmem [shape: f32[2,2,1], index: 2, kind: input, shape index: {}]   ;;  %s1311_s3 = inlined_call_operand.vmem [shape: f32[2,32,1], index: 3, kind: input, shape index: {}]   ;;  %s1312_s4 = inlined_call_operand.vmem [shape: f32[32,4], index: 4, kind: input, shape index: {}]   ;;  %s1313_s5 = inlined_call_operand.vmem [shape: f32[4,32], index: 5, kind: input, shape index: {}]   ;;  %s1314_s6 = inlined_call_operand.vmem [shape: f32[4,1], index: 6, kind: input, shape index: {}]   ;;  %s1315_s7 = inlined_call_operand.hbm [shape: f32[2,4,256], index: 7, kind: output, shape index: {}]  }
   0x1   :  { %14 = vsyncpa [#allocation3 + $0x1], 0  ;;  %s1005_s24 = smov 0   ;;  %s1007_s25 = smov 0  }
   0x2   :  { %s1009_s26 = smov 0   ;;  %s1011_s27 = smov 0  }
   0x3 LB: > { %s1026_s28 = sadd.s32 4294967295, %s962_s27   ;;  %s786_s29 = sadd.s32 4294967294, %s962_s27   ;;  %s962_s27 = sphi %s1011_s27, %s1339_s27   ;;  %s958_s26 = sphi %s1009_s26, %s1338_s26   ;;  %s954_s25 = sphi %s1007_s25, %s1337_s25   ;;  %s950_s24 = sphi %s1005_s24, %s1336_s24  }
   0x4   : > { %s1030_s30 = sadd.s32 1, %s962_s27   ;;  %s194_s8 = sadd.s32 1, %s958_s26 }
   0x5   : > { %s191_s9 = ssub.s32 %s962_s27, %s1030_s30  ;;  %p204_p0 = scmp.ne.s32.totalorder %s958_s26, %s954_s25 }
   0x6   : > { %p192_p1 = scmp.eq.s32.totalorder %s191_s9, 0  ;;  %p205_p2 = scmp.eq.s32.totalorder %s1026_s28, 1 }
   0x7   : > { %p210_p3 = scmp.ne.s32.totalorder %s954_s25, %s950_s24  ;;  %p211_p4 = scmp.eq.s32.totalorder %s786_s29, 1 }
   0x8   : > { %s1041_s10 = scalar_select %p192_p1, %s958_s26, %s194_s8  }
   0x9   : > { %p1043_p5 = por %p205_p2, %p204_p0  ;;  %p1047_p6 = por %p211_p4, %p210_p3 }
   0xa   : > { %p789_p7 = scmp.ge.s32.totalorder %s962_s27, 1  ;;  %p269_p8 = scmp.lt.s32.totalorder %s962_s27, 3 }
   0xc   : > { %p270_p9 = pnand %p789_p7, %p269_p8 }
   0xd   : > { %p315_p10 = scmp.lt.s32.totalorder (!%p270_p9), %s1026_s28, 1 }
   0xe   : > { %273 = sbr.rel (%p270_p9) target bundleno = 414 (0x19e), region = 48 }
  0x13   : > { %s316_s13 = scalar_select %p315_p10, %s1026_s28, 1  ;;  %v964_v3 = vmov 0   ;;  %vm1316_vm0 = vcmask 1043456   ;;  %v349_v14 = vld [vmem:[%s1312_s4] sm:$0xff]  ;;  %vm381_vm1 = vcmask 31744   ;;  %v352_v15 = vld [vmem:[%s1312_s4 + $0x18] sm:$0xff] }
  0x14   : > { %866 = vset.pattern.permute.xlu1 %v964_v3  ;;  %865 = vset.pattern.permute.xlu0 %v964_v3  ;;  %v350_v18 = vld [vmem:[%s1312_s4 + $0x8] sm:$0xff]  ;;  %v351_v19 = vld [vmem:[%s1312_s4 + $0x10] sm:$0xff] }
  0x15   : > { %s795_s14 = sshll.u32 %s316_s13, 1  ;;  %s817_s18 = sshll.u32 %s316_s13, 5  ;;  %867 = vset.pattern.permute.xlu2 %v964_v3 }
  0x16   : > { %s328_s17 = scalar_lea.vmem %s1310_s2, %s795_s14  ;;  %s333_s21 = scalar_lea.vmem %s1311_s3, %s817_s18 }
  0x17   : > { %v336_v0 = vld [vmem:[%s328_s17] sm:$0x1]  ;;  %v337_v1 = vld [vmem:[%s328_s17 + $0x1] sm:$0x1]  ;;  %v354_v2 = vld [vmem:[%s333_s21 + $0x8] sm:$0xff]  ;;  %s815_s22 = sshll.u32 %s316_s13, 3 }
  0x18   : > { %821 = vpush %v336_v0  ;;  %364 = vperm.xlu1 %866, %v354_v2   ;;  %v356_v4 = vld [vmem:[%s333_s21 + $0x18] sm:$0xff]  ;;  %v353_v5 = vld [vmem:[%s333_s21] sm:$0xff]  ;;  %s319_s8 = scalar_lea.vmem %s1308_s0, %s815_s22  ;;  %s324_s15 = scalar_lea.vmem %s1309_s1, %s815_s22  ;;  %v355_v11 = vld [vmem:[%s333_s21 + $0x10] sm:$0xff] }
  0x19   : > { %823 = vpush %v337_v1  ;;  %374 = vperm.xlu0 %865, %v356_v4   ;;  %v334_v6 = vld [vmem:[%s319_s8] sm:$0xff]  ;;  %s818_s13 = sshll.u32 %s1026_s28, 3 }
  0x1a   : > { %v335_v7 = vld [vmem:[%s324_s15] sm:$0xff]  ;;  %s686_s20 = scalar_lea.hbm %s1315_s7, %s818_s13  ;;  %s920_s15 = scalar_lea.hbm %s1315_s7, 16 }
  0x1b   : > { %s690_s23 = sshll.u32 %s686_s20, 4  ;;  %s691_s23 = int_to_ptr.hbm [resolvable:$true] %s690_s23 }
  0x1c   : > { %s914_s29 = sshra.s32 %s691_s23, 4  ;;  %s915_s29 = int_to_ptr.hbm [resolvable:$true] %s914_s29 }
  0x1d   : > { %s916_s8 = scalar_lea.hbm %s915_s29, 8  ;;  %p921_p0 = scmp.lt.s32.totalorder %s915_s29, %s1315_s7 }
  0x1e   : > { %p917_p11 = scmp.ne.s32.totalorder %s915_s29, %s916_s8  ;;  %p922_p1 = scmp.lt.s32.totalorder %s920_s15, %s916_s8 }
  0x20   : > { %359 = vperm.xlu1 %866, %v353_v5   ;;  %p918_p12 = pnand %p917_p11, %p1043_p5  ;;  %p923_p2 = por %p922_p1, %p921_p0 }
  0x21   : > { %369 = vperm.xlu0 %865, %v355_v11  }
  0x22   : > { %p919_p13 = pneg %p918_p12 }
  0x24   : > { %p924_p3 = pnand %p923_p2, %p919_p13 }
  0x49   : > { %s822_s16 = spop %821 }
  0x4a   : > { %v340_v8 = vstv %s822_s16  ;;  %s824_s17 = spop %823  ;;  %s312_s16 = sand.u32 1, %s954_s25  }
  0x4b   : > { %v342_v9 = vmul.f32 %v340_v8, %v334_v6  ;;  %v345_v10 = vstv %s824_s17  ;;  %s790_s17 = sshll.u32 %s312_s16, 3  ;;  %s675_s28 = scalar_lea.sflag [#allocation3], %s312_s16 }
  0x4c   : > { %v347_v12 = vmul.f32 %v345_v10, %v335_v7  ;;  %v618_v7 = vld [vmem:[%s1314_s6] sm:$0xf]  ;;  %s314_s21 = scalar_lea.vmem [#allocation2], %s790_s17 }
  0x4d   : > { %621 = vperm.xlu2 %867, %v618_v7   ;;  %s688_s22 = sshll.u32 %s314_s21, 4  ;;  %s689_s22 = int_to_ptr.vmem [resolvable:$true] %s688_s22 }
  0x4e   : > { %v348_v13 = vadd.f32 %v347_v12, %v342_v9 }
  0x50   : > { %378 = vst [vmem:[#allocation1] ss:$2 sm:$0xff] %v348_v13 }
  0x57   : > { %v379_v16 = vld.sshfl [vmem:[#allocation1] sm:$0xff pattern:$0x75316420]  ;;  %v380_v17 = vld.sshfl [vmem:[#allocation1 + $0x8] sm:$0xff pattern:$0x75316420] }
  0x58   : > { %798 = vmatpush.msk.msra.mxu0 %vm1316_vm0, %v379_v16  ;;  %819 = vmatpush.msk.msra.mxu2 %vm1316_vm0, %v379_v16 }
  0x59   : > { %803 = vmatpush.msk.msra.mxu1 %vm1316_vm0, %v380_v17  ;;  %820 = vmatpush.msk.msra.mxu3 %vm1316_vm0, %v380_v17 }
  0x5a   : > { %799 = vmatmul.msk.f32.vlgmr.msra.gmra.mxu0 %vm381_vm1, %v349_v14  ;;  %802 = vmatmul.msk.f32.vlgmr.msra.gmra.mxu2 %vm381_vm1, %v352_v15 }
  0x5b   : > { %804 = vmatmul.msk.f32.vlgmr.msra.gmra.mxu1 %vm381_vm1, %v349_v14  ;;  %807 = vmatmul.msk.f32.vlgmr.msra.gmra.mxu3 %vm381_vm1, %v352_v15 }
  0x62   : > { %800 = vmatmul.msk.f32.gmra.mxu0 %vm381_vm1, %v350_v18 }
  0x63   : > { %805 = vmatmul.msk.f32.gmra.mxu1 %vm381_vm1, %v350_v18 }
  0x6a   : > { %801 = vmatmul.msk.f32.gmra.mxu0 %vm381_vm1, %v351_v19 }
  0x6b   : > { %806 = vmatmul.msk.f32.gmra.mxu1 %vm381_vm1, %v351_v19 }
  0x8a   : > { %v365_v20 = vpop.permute.xlu1 %364 }
  0x8b   : > { %v375_v29 = vpop.permute.xlu0 %374 }
  0x92   : > { %v360_v21 = vpop.permute.xlu1 %359 }
  0x93   : > { %v370_v50 = vpop.permute.xlu0 %369 }
  0xd7   : > { %v416_v22 = vpop.f32.mrf.mxu0 }
  0xd8   : > { %v1091_v23 = vadd.f32 %v416_v22, %v360_v21  ;;  %v445_v24 = vpop.f32.mrf.mxu1 }
  0xd9   : > { %v1093_v25 = vadd.f32 %v445_v24, %v360_v21 }
  0xda   : > { %v457_v26 = vsub.f32 0.0, %v1091_v23 }
  0xdb   : > { %v458_v27 = vsub.f32 0.0, %v1093_v25 }
  0xdc   : > { %v465_v28 = vmul.f32 1.442695, %v457_v26 }
  0xdd   : > { %v467_v30 = vmul.f32 1.442695, %v458_v27  ;;  %v425_v31 = vpop.f32.mrf.mxu2 }
  0xde   : > { %868 = vpow2.f32 %v465_v28  ;;  %v1097_v32 = vadd.f32 %v425_v31, %v375_v29  ;;  %v454_v33 = vpop.f32.mrf.mxu3 }
  0xdf   : > { %870 = vpow2.f32 %v467_v30  ;;  %v1099_v34 = vadd.f32 %v454_v33, %v375_v29  ;;  %v419_v35 = vpop.f32.mrf.mxu0 }
  0xe0   : > { %v463_v36 = vsub.f32 0.0, %v1097_v32  ;;  %v1102_v37 = vadd.f32 %v419_v35, %v365_v20  ;;  %v448_v38 = vpop.f32.mrf.mxu1 }
  0xe1   : > { %v464_v39 = vsub.f32 0.0, %v1099_v34  ;;  %v1105_v40 = vadd.f32 %v448_v38, %v365_v20 }
  0xe2   : > { %v477_v41 = vmul.f32 1.442695, %v463_v36  ;;  %v459_v42 = vsub.f32 0.0, %v1102_v37 }
  0xe3   : > { %v479_v43 = vmul.f32 1.442695, %v464_v39  ;;  %v460_v44 = vsub.f32 0.0, %v1105_v40 }
  0xe4   : > { %v869_v45 = vpop.eup %868  ;;  %872 = vpow2.f32 %v477_v41  ;;  %v469_v46 = vmul.f32 1.442695, %v459_v42 }
  0xe5   : > { %v871_v47 = vpop.eup %870  ;;  %874 = vpow2.f32 %v479_v43  ;;  %v471_v48 = vmul.f32 1.442695, %v460_v44  ;;  %v1109_v49 = vadd.f32 1.0, %v869_v45 }
  0xe6   : > { %876 = vpow2.f32 %v469_v46  ;;  %v1111_v52 = vadd.f32 1.0, %v871_v47 }
  0xe7   : > { %v422_v51 = vpop.f32.mrf.mxu0  ;;  %878 = vpow2.f32 %v471_v48  ;;  %v500_v4 = vand.u32 2147483648, %v1109_v49  ;;  %v498_v12 = vand.u32 2147483647, %v1109_v49  ;;  %vm494_vm7 = vweird.f32 %v1109_v49 }
  0xe8   : > { %v1113_v53 = vadd.f32 %v422_v51, %v370_v50  ;;  %v451_v54 = vpop.f32.mrf.mxu1  ;;  %880 = vrcp.f32 %v1109_v49  ;;  %v513_v14 = vand.u32 2147483647, %v1111_v52  ;;  %v515_v18 = vand.u32 2147483648, %v1111_v52 }
  0xe9   : > { %v1115_v55 = vadd.f32 %v451_v54, %v370_v50  ;;  %882 = vrcp.f32 %v1111_v52  ;;  %v1136_v13 = vor.u32 1.1754944e-38, %v500_v4  ;;  %vm509_vm12 = vweird.f32 %v1111_v52 }
  0xea   : > { %v873_v56 = vpop.eup %872  ;;  %v461_v57 = vsub.f32 0.0, %v1113_v53 }
  0xeb   : > { %v875_v58 = vpop.eup %874  ;;  %v487_v59 = vadd.f32 1.0, %v873_v56  ;;  %v462_v60 = vsub.f32 0.0, %v1115_v55 }
  0xec   : > { %v877_v61 = vpop.eup %876  ;;  %v488_v62 = vadd.f32 1.0, %v875_v58  ;;  %v473_v63 = vmul.f32 1.442695, %v461_v57 }
  0xed   : > { %884 = vrcp.f32 %v487_v59  ;;  %v1121_v0 = vadd.f32 1.0, %v877_v61  ;;  %v475_v1 = vmul.f32 1.442695, %v462_v60  ;;  %v879_v2 = vpop.eup %878  ;;  %v588_v9 = vand.u32 2147483647, %v487_v59 }
  0xee   : > { %886 = vrcp.f32 %v488_v62  ;;  %v1124_v3 = vadd.f32 1.0, %v879_v2  ;;  %v1127_v5 = vpop.eup %880  ;;  %vm584_vm2 = vweird.f32 %v487_v59  ;;  %v590_v16 = vand.u32 2147483648, %v487_v59 }
  0xef   : > { %888 = vrcp.f32 %v1121_v0  ;;  %v1129_v6 = vpop.eup %882  ;;  %vm599_vm3 = vweird.f32 %v488_v62  ;;  %v603_v21 = vand.u32 2147483647, %v488_v62  ;;  %vm1146_vm4 = vcmp.eq.f32.partialorder %v588_v9, 8.507059e+37 }
  0xf0   : > { %890 = vpow2.f32 %v473_v63  ;;  %v605_v29 = vand.u32 2147483648, %v488_v62  ;;  %v490_v33 = vmul.f32 %v1127_v5, %v1109_v49  ;;  %v505_v38 = vmul.f32 %v1129_v6, %v1111_v52 }
  0xf1   : > { %892 = vpow2.f32 %v475_v1  ;;  %v591_v41 = vor.u32 1.1754944e-38, %v590_v16  ;;  %vm604_vm9 = vcmp.eq.f32.partialorder %v603_v21, 8.507059e+37  ;;  %vm524_vm10 = vweird.f32 %v1121_v0 }
  0xf2   : > { %894 = vrcp.f32 %v1124_v3  ;;  %v606_v44 = vor.u32 1.1754944e-38, %v605_v29  ;;  %v528_v45 = vand.u32 2147483647, %v1121_v0  ;;  %v530_v47 = vand.u32 2147483648, %v1121_v0 }
  0xf3   : > { %v885_v8 = vpop.eup %884  ;;  %v491_v50 = vsub.f32 1.0, %v490_v33  ;;  %v543_v56 = vand.u32 2147483647, %v1124_v3  ;;  %v506_v57 = vsub.f32 1.0, %v505_v38  ;;  %vm539_vm13 = vweird.f32 %v1124_v3 }
  0xf4   : > { %v887_v10 = vpop.eup %886  ;;  %v580_v11 = vmul.f32 %v885_v8, %v487_v59  ;;  %vm585_vm5 = vweird.f32 %v885_v8  ;;  %v545_v1 = vand.u32 2147483648, %v1124_v3  ;;  %vm495_vm14 = vweird.f32 %v1127_v5 }
  0xf5   : > { %v1139_v15 = vpop.eup %888  ;;  %v595_v17 = vmul.f32 %v887_v10, %v488_v62  ;;  %vm600_vm6 = vweird.f32 %v887_v10  ;;  %vm586_vm8 = vmor %vm584_vm2, %vm585_vm5  ;;  %vm1179_vm15 = vcmp.eq.f32.partialorder %v528_v45, 8.507059e+37  ;;  %v492_v9 = vmul.f32 %v1127_v5, %v491_v50 }
  0xf6   : > { %v891_v19 = vpop.eup %890  ;;  %v581_v20 = vsub.f32 1.0, %v580_v11  ;;  %v520_v22 = vmul.f32 %v1139_v15, %v1121_v0  ;;  %vm601_vm11 = vmor %vm599_vm3, %vm600_vm6  ;;  %vm525_vm1 = vweird.f32 %v1139_v15  ;;  %vm1187_vm2 = vcmp.eq.f32.partialorder %v543_v56, 8.507059e+37 }
  0xf7   : > { %v893_v24 = vpop.eup %892  ;;  %v1144_v26 = vadd.f32 1.0, %v891_v19  ;;  %v596_v28 = vsub.f32 1.0, %v595_v17  ;;  %v507_v11 = vmul.f32 %v1129_v6, %v506_v57  ;;  %vm510_vm3 = vweird.f32 %v1129_v6  ;;  %vm1209_vm6 = vmor %vm494_vm7, %vm495_vm14 }
  0xf8   : > { %v1150_v30 = vadd.f32 1.0, %v893_v24  ;;  %v582_v31 = vmul.f32 %v885_v8, %v581_v20  ;;  %v1154_v35 = vpop.eup %894  ;;  %v521_v42 = vsub.f32 1.0, %v520_v22  ;;  %v493_v33 = vadd.f32 %v1127_v5, %v492_v9  ;;  %vm1228_vm7 = vmor %vm509_vm12, %vm510_vm3 }
  0xf9   : > { %896 = vrcp.f32 %v1144_v26  ;;  %v597_v36 = vmul.f32 %v887_v10, %v596_v28  ;;  %v535_v48 = vmul.f32 %v1154_v35, %v1124_v3  ;;  %v558_v17 = vand.u32 2147483647, %v1144_v26 }
  0xfa   : > { %898 = vrcp.f32 %v1150_v30  ;;  %v583_v39 = vadd.f32 %v885_v8, %v582_v31  ;;  %v522_v60 = vmul.f32 %v1139_v15, %v521_v42  ;;  %v560_v19 = vand.u32 2147483648, %v1144_v26 }
  0xfb   : > { %v598_v43 = vadd.f32 %v887_v10, %v597_v36  ;;  %v536_v61 = vsub.f32 1.0, %v535_v48  ;;  %v573_v24 = vand.u32 2147483647, %v1150_v30  ;;  %vm540_vm5 = vweird.f32 %v1154_v35 }
  0xfc   : > { %v587_v46 = vsel %vm586_vm8, %v885_v8, %v583_v39  ;;  %v523_v20 = vadd.f32 %v1139_v15, %v522_v60  ;;  %v546_v49 = vor.u32 1.1754944e-38, %v545_v1  ;;  %v508_v38 = vadd.f32 %v1129_v6, %v507_v11 }
  0xfd   : > { %v592_v51 = vsel %vm1146_vm4, %v591_v41, %v587_v46  ;;  %v602_v54 = vsel %vm601_vm11, %v887_v10, %v598_v43  ;;  %v537_v8 = vmul.f32 %v1154_v35, %v536_v61  ;;  %vm1198_vm4 = vcmp.eq.f32.partialorder %v498_v12, 8.507059e+37 }
  0xfe   : > { %v615_v58 = vmul.f32 %v592_v51, %v1097_v32  ;;  %v607_v59 = vsel %vm604_vm9, %v606_v44, %v602_v54  ;;  %v531_v32 = vor.u32 1.1754944e-38, %v530_v47  ;;  %v575_v12 = vand.u32 2147483648, %v1150_v30  ;;  %vm1218_vm9 = vmor %vm524_vm10, %vm525_vm1 }
  0xff   : > { %v897_v62 = vpop.eup %896  ;;  %v616_v63 = vmul.f32 %v607_v59, %v1099_v34  ;;  %v538_v27 = vadd.f32 %v1154_v35, %v537_v8  ;;  %vm554_vm10 = vweird.f32 %v1144_v26  ;;  %vm569_vm14 = vweird.f32 %v1150_v30  ;;  %vm1241_vm1 = vmor %vm539_vm13, %vm540_vm5 }
 0x100   : > { %v899_v2 = vpop.eup %898  ;;  %640 = vmatpush.msrb.mxu2 %v615_v58  ;;  %v550_v4 = vmul.f32 %v897_v62, %v1144_v26  ;;  %vm555_vm8 = vweird.f32 %v897_v62  ;;  %v527_v41 = vsel %vm1218_vm9, %v1139_v15, %v523_v20  ;;  %vm559_vm3 = vcmp.eq.f32.partialorder %v558_v17, 8.507059e+37 }
 0x101   : > { %660 = vmatpush.msrb.mxu3 %v616_v63  ;;  %v565_v34 = vmul.f32 %v899_v2, %v1150_v30  ;;  %vm570_vm11 = vweird.f32 %v899_v2  ;;  %vm556_vm12 = vmor %vm554_vm10, %vm555_vm8  ;;  %v561_v43 = vor.u32 1.1754944e-38, %v560_v19  ;;  %v542_v26 = vsel %vm1241_vm1, %v1154_v35, %v538_v27 }
 0x102   : > { %v551_v16 = vsub.f32 1.0, %v550_v4  ;;  %vm571_vm0 = vmor %vm569_vm14, %vm570_vm11  ;;  %vm574_vm9 = vcmp.eq.f32.partialorder %v573_v24, 8.507059e+37  ;;  %v576_v15 = vor.u32 1.1754944e-38, %v575_v12  ;;  %v497_v3 = vsel %vm1209_vm6, %v1127_v5, %v493_v33 }
 0x103   : > { %v566_v22 = vsub.f32 1.0, %v565_v34  ;;  %v532_v47 = vsel %vm1179_vm15, %v531_v32, %v527_v41  ;;  %v512_v48 = vsel %vm1228_vm7, %v1129_v6, %v508_v38  ;;  %v547_v51 = vsel %vm1187_vm2, %v546_v49, %v542_v26 }
 0x104   : > { %v552_v29 = vmul.f32 %v897_v62, %v551_v16  ;;  %v516_v54 = vor.u32 1.1754944e-38, %v515_v18  ;;  %v502_v56 = vsel %vm1198_vm4, %v1136_v13, %v497_v3  ;;  %v612_v57 = vmul.f32 %v547_v51, %v1105_v40 }
 0x105   : > { %v567_v36 = vmul.f32 %v899_v2, %v566_v22  ;;  %v609_v18 = vmul.f32 %v502_v56, %v1091_v23  ;;  %vm624_vm13 = vcmask 261120   ;;  %vm1335_vm15 = vcmask 1043456  }
 0x106   : > { %v553_v0 = vadd.f32 %v897_v62, %v552_v29 }
 0x107   : > { %v568_v44 = vadd.f32 %v899_v2, %v567_v36 }
 0x108   : > { %v557_v30 = vsel %vm556_vm12, %v897_v62, %v553_v0 }
 0x109   : > { %v562_v45 = vsel %vm559_vm3, %v561_v43, %v557_v30  ;;  %v572_v46 = vsel %vm571_vm0, %v899_v2, %v568_v44  ;;  %vm514_vm0 = vcmp.eq.f32.partialorder %v513_v14, 8.507059e+37 }
 0x10a   : > { %v613_v35 = vmul.f32 %v562_v45, %v1113_v53  ;;  %v577_v50 = vsel %vm574_vm9, %v576_v15, %v572_v46  ;;  %v611_v53 = vmul.f32 %v532_v47, %v1102_v37  ;;  %v517_v6 = vsel %vm514_vm0, %v516_v54, %v512_v48  ;;  %v622_v37 = vpop.permute.xlu2 %621 }
 0x10b   : > { %v614_v5 = vmul.f32 %v577_v50, %v1115_v55  ;;  %v617_v55 = vld [vmem:[%s1313_s5] sm:$0xf]  ;;  %v610_v52 = vmul.f32 %v517_v6, %v1093_v25 }
 0x10c   : > { %641 = vmatpush.msrb.mxu2 %v613_v35 }
 0x10d   : > { %661 = vmatpush.msrb.mxu3 %v614_v5 }
 0x10e   : > { %642 = vmatpush.msrb.mxu2 %v611_v53 }
 0x10f   : > { %662 = vmatpush.msrb.mxu3 %v612_v57 }
 0x110   : > { %643 = vmatpush.msrb.mxu2 %v609_v18 }
 0x111   : > { %663 = vmatpush.msrb.mxu3 %v610_v52  ;;  %808 = vmatmul.msk.f32.vlgmr.msrb.gmra.mxu2 %vm624_vm13, %v617_v55 }
 0x112   : > { %809 = vmatmul.msk.f32.vlgmr.msrb.gmra.mxu3 %vm624_vm13, %v617_v55 }
 0x194   : > { %v645_v40 = vpop.f32.mrf.mxu2 }
 0x195   : > { %v665_v23 = vpop.f32.mrf.mxu3  ;;  %v646_v14 = vadd.f32 %v645_v40, %v622_v37 }
 0x196   : > { %v666_v13 = vadd.f32 %v665_v23, %v622_v37 }
 0x198   : > { %v670_v25 = vrot.slane %v666_v13, 4 }
 0x19a   : > { %v671_v58 = vsel %vm1335_vm15, %v646_v14, %v670_v25 }
 0x19b   : > { %673 = vst [vmem:[%s314_s21] sm:$0xff] %v671_v58 }
 0x19c   : > { %927 = shalt.err (!%p924_p3)
}
 0x19d   : > { %825 = dma.vmem_to_hbm [thread:$0]  (%p1043_p5), %s689_s22, 128, %s691_s23, %s675_s28  }
 0x19e PF: > { %p831_p4 = scmp.ge.s32.totalorder %s962_s27, 2  ;;  %s702_s16 = sand.u32 1, %s950_s24  }
 0x19f   : > { %s703_s18 = scalar_lea.sflag [#allocation3], %s702_s16 }
 0x1a0   : > { %p828_p7 = pnand %p831_p4, %p1047_p6 }
 0x1a2   : > { %p829_p8 = pneg %p828_p7 }
 0x1a4   : > { %945 = dma.done.wait (%p829_p8), %s703_s18, 128  }
 0x1a5   : > { %947 = vsyncadd (%p829_p8), %s703_s18, 4294967168  ;;  %p17_p9 = scmp.ge.s32.totalorder %s1030_s30, 4   ;;  %s1336_s24 = smov %s954_s25 }
 0x1a6   : > { %s1337_s25 = smov %s958_s26  ;;  %s1338_s26 = smov %s1041_s10 }
 0x1a7   : > { %s1339_s27 = smov %s1030_s30  ;;  %19 = sbr.rel (!%p17_p9) target bundleno = 3 (0x3), region = 92 }
 0x1ac   :  { %709 = vsyncpa [#allocation3], 1 }
 0x1ad   :  { %711 = vsyncpa [#allocation3 + $0x1], 1 }

</bundles_post_ra>
